<compile_context>
chip_gen: v6e
topology: v6e:2x2x1
jax: 0.10.0
libtpu: 0.0.40
codegen_flags: <defaults>
</compile_context>

<pallas_src>
import functools
import math

import jax
import jax.numpy as jnp
import numpy as np
from jax.experimental import pallas as pl
from jax.experimental.pallas import tpu as pltpu


_HAS_EINSHAPE = hasattr(pltpu, "einshape")


def _to_heads(t, n_heads, head_size):
    """(N, n_heads*head_size) -> (n_heads, N, head_size)."""
    n = t.shape[0]
    if _HAS_EINSHAPE:
        return pltpu.einshape("mhd->hmd", t.reshape(n, n_heads, head_size))
    # Portable fallback (more relayout traffic); only used if einshape is absent.
    return jnp.stack(
        [t[:, h * head_size:(h + 1) * head_size] for h in range(n_heads)], axis=0)


def _from_heads(t):
    """(n_heads, N, head_size) -> (N, n_heads*head_size)."""
    n_heads, n, head_size = t.shape
    if _HAS_EINSHAPE:
        return pltpu.einshape("hmd->mhd", t).reshape(n, n_heads * head_size)
    return jnp.concatenate([t[h] for h in range(n_heads)], axis=-1)


# --------------------------------------------------------------------------
# Kernel. Grid = (batch, query_tiles).
# --------------------------------------------------------------------------
def _trigger_kernel(
    x_ref,                      # (Np, H)  f32  (padded) token vectors, one batch element
    w_qkv_ref, b_qkv_ref,       # (H, 3H) bf16, (1, 3H) f32 (Wq/bq pre-scaled by 1/sqrt(hs))
    gamma_ref, beta_ref,        # (1, H) f32 layer norm
    wd_ref, bd_ref,             # (H, H) bf16, (1, H) f32   dense
    w_se_ref, b_se_ref,         # (H, 2) bf16, (1, 2) f32   [start | end] classifiers
    out_ref,                    # (tq, 2) f32 sigmoid([start | end]) for this query tile
    qh_scr, kh_scr, vh_scr,     # (nh, Np, hs) bf16 scratch, persistent across q tiles
    *, n_heads, head_size, tq, n_valid, gelu_approx,
):
    Np, H = x_ref.shape
    qt = pl.program_id(1)

    # ---- Once per batch element: fused Q/K/V projection over the full sequence.
    # One (Np,H)x(H,3H) bf16 MXU matmul; results stored head-major in VMEM scratch.
    @pl.when(qt == 0)
    def _():
        x_b = x_ref[...].astype(jnp.bfloat16)
        qkv = jnp.dot(x_b, w_qkv_ref[...],
                      preferred_element_type=jnp.float32) + b_qkv_ref[...]
        qh_scr[...] = _to_heads(qkv[:, 0 * H:1 * H], n_heads, head_size).astype(jnp.bfloat16)
        kh_scr[...] = _to_heads(qkv[:, 1 * H:2 * H], n_heads, head_size).astype(jnp.bfloat16)
        vh_scr[...] = _to_heads(qkv[:, 2 * H:3 * H], n_heads, head_size).astype(jnp.bfloat16)

    if tq == Np:               # single-tile case: no dynamic slicing needed
        qh = qh_scr[...]
        xq = x_ref[...]
    else:
        q0 = pl.multiple_of(qt * tq, tq)
        qh = qh_scr[:, pl.ds(q0, tq), :]
        xq = x_ref[pl.ds(q0, tq), :]

    # ---- Attention scores for this query tile (1/sqrt(hs) already folded in).
    scores = jnp.einsum("hqd,hkd->hqk", qh, kh_scr[...],
                        preferred_element_type=jnp.float32)      # (nh, tq, Np) f32

    # Only sequence-padding keys need masking; (1, 1, Np) additive broadcast.
    if n_valid < Np:
        key_idx = jax.lax.broadcasted_iota(jnp.int32, (1, 1, Np), 2)
        scores = scores + jnp.where(key_idx < n_valid,
                                    jnp.float32(0.0), jnp.float32(-1e30))

    # ---- Deferred-normalization softmax + PV matmul.
    m = jnp.max(scores, axis=-1, keepdims=True)                  # (nh, tq, 1)
    e = jnp.exp(scores - m)                                      # unnormalized probs
    l = jnp.sum(e, axis=-1, keepdims=True)                       # (nh, tq, 1)
    ctx_h = jnp.einsum("hqk,hkd->hqd", e.astype(jnp.bfloat16), vh_scr[...],
                       preferred_element_type=jnp.float32)       # (nh, tq, hs) f32
    ctx_h = ctx_h * pl.reciprocal(l, approx=True)                # normalize small tensor (EUP)
    ctx = _from_heads(ctx_h)                                     # (tq, H) f32

    # ---- Residual + LayerNorm (f32).
    y = xq + ctx
    mean = jnp.mean(y, axis=-1, keepdims=True)
    var = jnp.mean((y - mean) ** 2, axis=-1, keepdims=True)
    y = (y - mean) * jax.lax.rsqrt(var + 1e-5) * gamma_ref[...] + beta_ref[...]

    # ---- Dense + GELU (tanh approximation by default -> EUP).
    d = jnp.dot(y.astype(jnp.bfloat16), wd_ref[...],
                preferred_element_type=jnp.float32) + bd_ref[...]
    d = jax.nn.gelu(d, approximate=gelu_approx)

    # ---- Fused start/end classifiers + sigmoid, one lane-packed (tq, 2) slab.
    logits = jnp.dot(d.astype(jnp.bfloat16), w_se_ref[...],
                     preferred_element_type=jnp.float32) + b_se_ref[...]
    out_ref[...] = jax.nn.sigmoid(logits)


# --------------------------------------------------------------------------
# Builders / wrapper.
# --------------------------------------------------------------------------
@functools.lru_cache(maxsize=1)
def _vmem_limit_bytes():
    """~65% of physical per-core VMEM (v5e/v6e: 128 MiB, v7x: 64 MiB)."""
    try:
        cap = int(pltpu.get_tpu_info().vmem_capacity_bytes)
    except Exception:
        cap = 64 << 20
    return int(max(32 << 20, min(int(0.65 * cap), 100 << 20)))


def _pad_and_tile(n_tokens, n_heads):
    """Padded sequence length Np and query-tile size tq (tq divides Np)."""
    if n_tokens <= 128:
        np_pad = max(8, ((n_tokens + 7) // 8) * 8)     # sublane padding only
        return np_pad, np_pad
    np_pad = ((n_tokens + 127) // 128) * 128
    tq = 128
    # Keep the per-tile score working set (scores + exp copy) around <= 24 MiB.
    while tq > 16 and 2 * 4 * n_heads * tq * np_pad > 24 * 2**20:
        tq //= 2
    return np_pad, tq


@functools.lru_cache(maxsize=None)
def _build_call(B, Np, tq, H, n_heads, n_valid, gelu_approx):
    head_size = H // n_heads
    n_qt = Np // tq

    def wspec(shape):
        nd = len(shape)
        return pl.BlockSpec(shape, lambda b, qt: (0,) * nd)

    kernel = functools.partial(
        _trigger_kernel, n_heads=n_heads, head_size=head_size, tq=tq,
        n_valid=n_valid, gelu_approx=gelu_approx)

    return pl.pallas_call(
        kernel,
        out_shape=jax.ShapeDtypeStruct((B, Np, 2), jnp.float32),
        grid_spec=pltpu.PrefetchScalarGridSpec(
            num_scalar_prefetch=0,
            grid=(B, n_qt),
            in_specs=[
                pl.BlockSpec((None, Np, H), lambda b, qt: (b, 0, 0)),  # tokens
                wspec((H, 3 * H)), wspec((1, 3 * H)),                  # fused QKV
                wspec((1, H)), wspec((1, H)),                          # LN gamma, beta
                wspec((H, H)), wspec((1, H)),                          # dense
                wspec((H, 2)), wspec((1, 2)),                          # classifiers
            ],
            out_specs=pl.BlockSpec((None, tq, 2), lambda b, qt: (b, qt, 0)),
            scratch_shapes=[
                pltpu.VMEM((n_heads, Np, head_size), jnp.bfloat16),    # Q heads
                pltpu.VMEM((n_heads, Np, head_size), jnp.bfloat16),    # K heads
                pltpu.VMEM((n_heads, Np, head_size), jnp.bfloat16),    # V heads
            ],
        ),
        compiler_params=pltpu.CompilerParams(
            # Batch axis feeds v7x's 2nd TensorCore; the q-tile axis must stay
            # sequential (K/V scratch is filled at q_tile == 0), so B >= 2 is
            # required for full megacore utilization on v7x.
            dimension_semantics=("parallel", "arbitrary"),
            vmem_limit_bytes=_vmem_limit_bytes(),
        ),
    )


@functools.partial(jax.jit, static_argnames=("n_heads", "gelu_approx"))
def trigger_recognizer(token_vectors, attn_mask, params, *, n_heads, gelu_approx=True):
    """token_vectors: (B, N, H) f32, attn_mask: (B, N) -> (start, end), each (B, N).

    attn_mask is accepted for API parity with the PyTorch module but not used:
    the module adds attn_mask[:, None, :, None] (broadcast over keys), which is
    a per-query constant shift that softmax cancels.
    NOTE: the sequence length is baked statically -> one compile per distinct N.
    """
    del attn_mask
    B, N, H = token_vectors.shape
    assert H % n_heads == 0
    head_size = H // n_heads
    Np, tq = _pad_and_tile(N, n_heads)

    x = token_vectors.astype(jnp.float32)
    if Np != N:
        x = jnp.pad(x, ((0, 0), (0, Np - N), (0, 0)))

    # ---- Pack parameters (fused under jit; 1/sqrt(hs) folded into Q). ----
    inv = 1.0 / math.sqrt(head_size)
    w_qkv = jnp.concatenate(
        [params["wq"] * inv, params["wk"], params["wv"]], axis=1).astype(jnp.bfloat16)
    b_qkv = jnp.concatenate(
        [params["bq"] * inv, params["bk"], params["bv"]], axis=1).astype(jnp.float32)
    gamma = params["gamma"].astype(jnp.float32)
    beta = params["beta"].astype(jnp.float32)
    wd = params["wd"].astype(jnp.bfloat16)
    bd = params["bd"].astype(jnp.float32)
    w_se = jnp.concatenate(
        [params["ws"].reshape(H, 1), params["we"].reshape(H, 1)], axis=1).astype(jnp.bfloat16)
    b_se = jnp.concatenate(
        [params["bs"].reshape(1, 1), params["be"].reshape(1, 1)], axis=1).astype(jnp.float32)

    call = _build_call(B, Np, tq, H, n_heads, N, gelu_approx)
    probs = call(x, w_qkv, b_qkv, gamma, beta, wd, bd, w_se, b_se)   # (B, Np, 2)
    return probs[:, :N, 0], probs[:, :N, 1]


# --------------------------------------------------------------------------
# Pure-JAX f32 reference mirroring the PyTorch forward (eval mode).
# --------------------------------------------------------------------------
def _reference(token_vectors, attn_mask, params, *, n_heads):
    B, N, H = token_vectors.shape
    hs = H // n_heads
    x = token_vectors.astype(jnp.float32)
    q = x @ params["wq"] + params["bq"]
    k = x @ params["wk"] + params["bk"]
    v = x @ params["wv"] + params["bv"]

    def split(t):
        return t.reshape(B, N, n_heads, hs).transpose(0, 2, 1, 3)

    q, k, v = split(q), split(k), split(v)
    scores = jnp.einsum("bhqd,bhkd->bhqk", q, k) / math.sqrt(hs)
    scores = scores + attn_mask[:, None, :, None]
    probs = jax.nn.softmax(scores, axis=-1)
    ctx = jnp.einsum("bhqk,bhkd->bhqd", probs, v)
    ctx = ctx.transpose(0, 2, 1, 3).reshape(B, N, H)

    y = x + ctx
    mean = jnp.mean(y, axis=-1, keepdims=True)
    var = jnp.mean((y - mean) ** 2, axis=-1, keepdims=True)
    y = (y - mean) * jax.lax.rsqrt(var + 1e-5) * params["gamma"] + params["beta"]
    d = jax.nn.gelu(y @ params["wd"] + params["bd"], approximate=False)
    start = jax.nn.sigmoid(jnp.sum(d * params["ws"], axis=-1) + params["bs"][0, 0])
    end = jax.nn.sigmoid(jnp.sum(d * params["we"], axis=-1) + params["be"][0, 0])
    return start, end


def _init_params(key, hidden_size):
    H = hidden_size
    ks = jax.random.split(key, 12)
    s = 1.0 / math.sqrt(H)

    def lin(k, shape):
        return jax.random.uniform(k, shape, jnp.float32, -s, s)

    # Weights stored pre-transposed as (in, out) so y = x @ W + b.
    return {
        "wq": lin(ks[0], (H, H)), "bq": lin(ks[1], (1, H)),
        "wk": lin(ks[2], (H, H)), "bk": lin(ks[3], (1, H)),
        "wv": lin(ks[4], (H, H)), "bv": lin(ks[5], (1, H)),
        "gamma": jnp.ones((1, H), jnp.float32),
        "beta": jnp.zeros((1, H), jnp.float32),
        "wd": lin(ks[6], (H, H)), "bd": lin(ks[7], (1, H)),
        "ws": lin(ks[8], (1, H)), "bs": lin(ks[9], (1, 1)),
        "we": lin(ks[10], (1, H)), "be": lin(ks[11], (1, 1)),
    }


if __name__ == "__main__":
    B, N, H, n_heads = 2, 8, 32, 4
    key = jax.random.PRNGKey(0)
    k_x, k_p = jax.random.split(key, 2)

    token_vectors = jax.random.normal(k_x, (B, N, H), jnp.float32)
    # BERT-style additive mask: 0 for real tokens, -1e4 for "padding" positions.
    # (For this module it is a softmax-invariant per-query shift.)
    attn_mask = jnp.zeros((B, N), jnp.float32).at[1, -2:].set(-1e4)

    params = _init_params(k_p, H)

    start, end = trigger_recognizer(token_vectors, attn_mask, params, n_heads=n_heads)
    start, end = jax.block_until_ready((start, end))

    start_ref, end_ref = _reference(token_vectors, attn_mask, params, n_heads=n_heads)
    # bf16 MXU operands (f32 accumulation) + tanh-GELU -> bf16-appropriate tolerance.
    np.testing.assert_allclose(np.asarray(start), np.asarray(start_ref), rtol=2e-2, atol=2.5e-2)
    np.testing.assert_allclose(np.asarray(end), np.asarray(end_ref), rtol=2e-2, atol=2.5e-2)

    print("KERNEL_OK")
</pallas_src>

<mosaic_0001>
module attributes {stable_mosaic.version = 11 : i64} {
  func.func @_trigger_kernel(%arg0: i32, %arg1: i32, %arg2: memref<1x8x32xf32, #tpu.memory_space<vmem>>, %arg3: memref<32x96xbf16, #tpu.memory_space<vmem>>, %arg4: memref<1x96xf32, #tpu.memory_space<vmem>>, %arg5: memref<1x32xf32, #tpu.memory_space<vmem>>, %arg6: memref<1x32xf32, #tpu.memory_space<vmem>>, %arg7: memref<32x32xbf16, #tpu.memory_space<vmem>>, %arg8: memref<1x32xf32, #tpu.memory_space<vmem>>, %arg9: memref<32x2xbf16, #tpu.memory_space<vmem>>, %arg10: memref<1x2xf32, #tpu.memory_space<vmem>>, %arg11: memref<1x8x2xf32, #tpu.memory_space<vmem>>, %arg12: memref<4x8x8xbf16, #tpu.memory_space<vmem>>, %arg13: memref<4x8x8xbf16, #tpu.memory_space<vmem>>, %arg14: memref<4x8x8xbf16, #tpu.memory_space<vmem>>) attributes {dimension_semantics = [#tpu.dimension_semantics<parallel>, #tpu.dimension_semantics<arbitrary>], iteration_bounds = array<i64: 2, 1>, scalar_prefetch = 0 : i64, scratch_operands = 3 : i64, tpu.core_type = #tpu.core_type<tc>, window_params = [{transform_indices = @transform_0, window_bounds = array<i64: 1, 8, 32>}, {pipeline_mode = #tpu.pipeline_mode<synchronous>, transform_indices = @transform_1, window_bounds = array<i64: 32, 96>}, {pipeline_mode = #tpu.pipeline_mode<synchronous>, transform_indices = @transform_2, window_bounds = array<i64: 1, 96>}, {pipeline_mode = #tpu.pipeline_mode<synchronous>, transform_indices = @transform_3, window_bounds = array<i64: 1, 32>}, {pipeline_mode = #tpu.pipeline_mode<synchronous>, transform_indices = @transform_4, window_bounds = array<i64: 1, 32>}, {pipeline_mode = #tpu.pipeline_mode<synchronous>, transform_indices = @transform_5, window_bounds = array<i64: 32, 32>}, {pipeline_mode = #tpu.pipeline_mode<synchronous>, transform_indices = @transform_6, window_bounds = array<i64: 1, 32>}, {pipeline_mode = #tpu.pipeline_mode<synchronous>, transform_indices = @transform_7, window_bounds = array<i64: 32, 2>}, {pipeline_mode = #tpu.pipeline_mode<synchronous>, transform_indices = @transform_8, window_bounds = array<i64: 1, 2>}, {transform_indices = @transform_9, window_bounds = array<i64: 1, 8, 2>}]} {
    %c0_i32 = arith.constant 0 : i32
    %0 = arith.cmpi eq, %arg1, %c0_i32 : i32
    %1 = arith.extui %0 : i1 to i32
    %c0_i32_0 = arith.constant 0 : i32
    %2 = arith.cmpi ne, %1, %c0_i32_0 : i32
    scf.if %2 {
      %c0_42 = arith.constant 0 : index
      %c0_43 = arith.constant 0 : index
      %c0_44 = arith.constant 0 : index
      %81 = vector.load %arg2[%c0_42, %c0_43, %c0_44] : memref<1x8x32xf32, #tpu.memory_space<vmem>>, vector<1x8x32xf32>
      %82 = vector.shape_cast %81 : vector<1x8x32xf32> to vector<8x32xf32>
      %83 = arith.truncf %82 : vector<8x32xf32> to vector<8x32xbf16>
      %c0_45 = arith.constant 0 : index
      %c0_46 = arith.constant 0 : index
      %84 = vector.load %arg3[%c0_45, %c0_46] : memref<32x96xbf16, #tpu.memory_space<vmem>>, vector<32x96xbf16>
      %cst_47 = arith.constant dense<0.000000e+00> : vector<8x96xf32>
      %85 = tpu.matmul %83, %84, %cst_47 {dimension_numbers = #tpu.dot_dimension_numbers<[1], [0], [0], [1], [0, 0, 1, 1], [], []>} : vector<8x32xbf16>, vector<32x96xbf16>, vector<8x96xf32> -> vector<8x96xf32>
      %c0_48 = arith.constant 0 : index
      %c0_49 = arith.constant 0 : index
      %86 = vector.load %arg4[%c0_48, %c0_49] : memref<1x96xf32, #tpu.memory_space<vmem>>, vector<1x96xf32>
      %87 = vector.broadcast %86 : vector<1x96xf32> to vector<8x96xf32>
      %88 = arith.addf %85, %87 : vector<8x96xf32>
      %89 = vector.extract_strided_slice %88 {offsets = [0, 0], sizes = [8, 32], strides = [1, 1]} : vector<8x96xf32> to vector<8x32xf32>
      %90 = vector.shape_cast %89 : vector<8x32xf32> to vector<8x4x8xf32>
      %91 = tpu.transpose %90, [1, 0, 2] : vector<8x4x8xf32> -> vector<4x8x8xf32>
      %92 = arith.truncf %91 : vector<4x8x8xf32> to vector<4x8x8xbf16>
      %c0_50 = arith.constant 0 : index
      %c0_51 = arith.constant 0 : index
      %c0_52 = arith.constant 0 : index
      %93 = vector.load %arg12[%c0_50, %c0_51, %c0_52] : memref<4x8x8xbf16, #tpu.memory_space<vmem>>, vector<4x8x8xbf16>
      tpu.vector_store %arg12[%c0_50, %c0_51, %c0_52], %92 {strides = array<i32>} : memref<4x8x8xbf16, #tpu.memory_space<vmem>>, vector<4x8x8xbf16>,
      %94 = vector.extract_strided_slice %88 {offsets = [0, 32], sizes = [8, 32], strides = [1, 1]} : vector<8x96xf32> to vector<8x32xf32>
      %95 = vector.shape_cast %94 : vector<8x32xf32> to vector<8x4x8xf32>
      %96 = tpu.transpose %95, [1, 0, 2] : vector<8x4x8xf32> -> vector<4x8x8xf32>
      %97 = arith.truncf %96 : vector<4x8x8xf32> to vector<4x8x8xbf16>
      %c0_53 = arith.constant 0 : index
      %c0_54 = arith.constant 0 : index
      %c0_55 = arith.constant 0 : index
      %98 = vector.load %arg13[%c0_53, %c0_54, %c0_55] : memref<4x8x8xbf16, #tpu.memory_space<vmem>>, vector<4x8x8xbf16>
      tpu.vector_store %arg13[%c0_53, %c0_54, %c0_55], %97 {strides = array<i32>} : memref<4x8x8xbf16, #tpu.memory_space<vmem>>, vector<4x8x8xbf16>,
      %99 = vector.extract_strided_slice %88 {offsets = [0, 64], sizes = [8, 32], strides = [1, 1]} : vector<8x96xf32> to vector<8x32xf32>
      %100 = vector.shape_cast %99 : vector<8x32xf32> to vector<8x4x8xf32>
      %101 = tpu.transpose %100, [1, 0, 2] : vector<8x4x8xf32> -> vector<4x8x8xf32>
      %102 = arith.truncf %101 : vector<4x8x8xf32> to vector<4x8x8xbf16>
      %c0_56 = arith.constant 0 : index
      %c0_57 = arith.constant 0 : index
      %c0_58 = arith.constant 0 : index
      %103 = vector.load %arg14[%c0_56, %c0_57, %c0_58] : memref<4x8x8xbf16, #tpu.memory_space<vmem>>, vector<4x8x8xbf16>
      tpu.vector_store %arg14[%c0_56, %c0_57, %c0_58], %102 {strides = array<i32>} : memref<4x8x8xbf16, #tpu.memory_space<vmem>>, vector<4x8x8xbf16>,
    } else {
    }
    %c0 = arith.constant 0 : index
    %c0_1 = arith.constant 0 : index
    %c0_2 = arith.constant 0 : index
    %3 = vector.load %arg12[%c0, %c0_1, %c0_2] : memref<4x8x8xbf16, #tpu.memory_space<vmem>>, vector<4x8x8xbf16>
    %c0_3 = arith.constant 0 : index
    %c0_4 = arith.constant 0 : index
    %c0_5 = arith.constant 0 : index
    %4 = vector.load %arg2[%c0_3, %c0_4, %c0_5] : memref<1x8x32xf32, #tpu.memory_space<vmem>>, vector<1x8x32xf32>
    %5 = vector.shape_cast %4 : vector<1x8x32xf32> to vector<8x32xf32>
    %c0_6 = arith.constant 0 : index
    %c0_7 = arith.constant 0 : index
    %c0_8 = arith.constant 0 : index
    %6 = vector.load %arg13[%c0_6, %c0_7, %c0_8] : memref<4x8x8xbf16, #tpu.memory_space<vmem>>, vector<4x8x8xbf16>
    "tpu.trace_start"() <{level = 10 : i32, message = "hqd,hkd->hqk"}> : () -> ()
    %cst = arith.constant dense<0.000000e+00> : vector<4x8x8xf32>
    %7 = tpu.matmul %3, %6, %cst {dimension_numbers = #tpu.dot_dimension_numbers<[2], [2], [1], [1], [0, 0, 0, 1, 1, 1], [0], [0]>} : vector<4x8x8xbf16>, vector<4x8x8xbf16>, vector<4x8x8xf32> -> vector<4x8x8xf32>
    "tpu.trace_stop"() : () -> ()
    %cst_9 = arith.constant dense<0xFF800000> : vector<4x8xf32>
    %8 = vector.multi_reduction <maximumf>, %7, %cst_9 [2] : vector<4x8x8xf32> to vector<4x8xf32>
    %9 = vector.shape_cast %8 : vector<4x8xf32> to vector<4x8x1xf32>
    %10 = vector.broadcast %9 : vector<4x8x1xf32> to vector<4x8x8xf32>
    %11 = arith.subf %7, %10 : vector<4x8x8xf32>
    %12 = math.exp %11 : vector<4x8x8xf32>
    %cst_10 = arith.constant dense<0.000000e+00> : vector<4x8xf32>
    %13 = vector.multi_reduction <add>, %12, %cst_10 [2] : vector<4x8x8xf32> to vector<4x8xf32>
    %14 = vector.shape_cast %13 : vector<4x8xf32> to vector<4x8x1xf32>
    %15 = arith.truncf %12 : vector<4x8x8xf32> to vector<4x8x8xbf16>
    %c0_11 = arith.constant 0 : index
    %c0_12 = arith.constant 0 : index
    %c0_13 = arith.constant 0 : index
    %16 = vector.load %arg14[%c0_11, %c0_12, %c0_13] : memref<4x8x8xbf16, #tpu.memory_space<vmem>>, vector<4x8x8xbf16>
    "tpu.trace_start"() <{level = 10 : i32, message = "hqk,hkd->hqd"}> : () -> ()
    %cst_14 = arith.constant dense<0.000000e+00> : vector<4x8x8xf32>
    %17 = tpu.matmul %15, %16, %cst_14 {dimension_numbers = #tpu.dot_dimension_numbers<[2], [1], [1], [2], [0, 0, 0, 1, 1, 2], [0], [0]>} : vector<4x8x8xbf16>, vector<4x8x8xbf16>, vector<4x8x8xf32> -> vector<4x8x8xf32>
    "tpu.trace_stop"() : () -> ()
    %18 = tpu.reciprocal %14 {approx = true} : vector<4x8x1xf32> -> vector<4x8x1xf32>
    %19 = vector.broadcast %18 : vector<4x8x1xf32> to vector<4x8x8xf32>
    %20 = arith.mulf %17, %19 : vector<4x8x8xf32>
    %21 = tpu.transpose %20, [1, 0, 2] : vector<4x8x8xf32> -> vector<8x4x8xf32>
    %22 = vector.shape_cast %21 : vector<8x4x8xf32> to vector<8x32xf32>
    %23 = arith.addf %5, %22 : vector<8x32xf32>
    %cst_15 = arith.constant dense<0.000000e+00> : vector<8xf32>
    %24 = vector.multi_reduction <add>, %23, %cst_15 [1] : vector<8x32xf32> to vector<8xf32>
    %25 = vector.shape_cast %24 : vector<8xf32> to vector<8x1xf32>
    %cst_16 = arith.constant 3.200000e+01 : f32
    %26 = vector.broadcast %cst_16 : f32 to vector<8x1xf32>
    %27 = arith.divf %25, %26 : vector<8x1xf32>
    %28 = vector.broadcast %27 : vector<8x1xf32> to vector<8x32xf32>
    %29 = arith.subf %23, %28 : vector<8x32xf32>
    %30 = arith.mulf %29, %29 : vector<8x32xf32>
    %cst_17 = arith.constant dense<0.000000e+00> : vector<8xf32>
    %31 = vector.multi_reduction <add>, %30, %cst_17 [1] : vector<8x32xf32> to vector<8xf32>
    %32 = vector.shape_cast %31 : vector<8xf32> to vector<8x1xf32>
    %cst_18 = arith.constant 3.200000e+01 : f32
    %33 = vector.broadcast %cst_18 : f32 to vector<8x1xf32>
    %34 = arith.divf %32, %33 : vector<8x1xf32>
    %35 = vector.broadcast %27 : vector<8x1xf32> to vector<8x32xf32>
    %36 = arith.subf %23, %35 : vector<8x32xf32>
    %cst_19 = arith.constant 9.99999974E-6 : f32
    %37 = vector.broadcast %cst_19 : f32 to vector<8x1xf32>
    %38 = arith.addf %34, %37 : vector<8x1xf32>
    %39 = math.rsqrt %38 : vector<8x1xf32>
    %40 = vector.broadcast %39 : vector<8x1xf32> to vector<8x32xf32>
    %41 = arith.mulf %36, %40 : vector<8x32xf32>
    %c0_20 = arith.constant 0 : index
    %c0_21 = arith.constant 0 : index
    %42 = vector.load %arg5[%c0_20, %c0_21] : memref<1x32xf32, #tpu.memory_space<vmem>>, vector<1x32xf32>
    %43 = vector.broadcast %42 : vector<1x32xf32> to vector<8x32xf32>
    %44 = arith.mulf %41, %43 : vector<8x32xf32>
    %c0_22 = arith.constant 0 : index
    %c0_23 = arith.constant 0 : index
    %45 = vector.load %arg6[%c0_22, %c0_23] : memref<1x32xf32, #tpu.memory_space<vmem>>, vector<1x32xf32>
    %46 = vector.broadcast %45 : vector<1x32xf32> to vector<8x32xf32>
    %47 = arith.addf %44, %46 : vector<8x32xf32>
    %48 = arith.truncf %47 : vector<8x32xf32> to vector<8x32xbf16>
    %c0_24 = arith.constant 0 : index
    %c0_25 = arith.constant 0 : index
    %49 = vector.load %arg7[%c0_24, %c0_25] : memref<32x32xbf16, #tpu.memory_space<vmem>>, vector<32x32xbf16>
    %cst_26 = arith.constant dense<0.000000e+00> : vector<8x32xf32>
    %50 = tpu.matmul %48, %49, %cst_26 {dimension_numbers = #tpu.dot_dimension_numbers<[1], [0], [0], [1], [0, 0, 1, 1], [], []>} : vector<8x32xbf16>, vector<32x32xbf16>, vector<8x32xf32> -> vector<8x32xf32>
    %c0_27 = arith.constant 0 : index
    %c0_28 = arith.constant 0 : index
    %51 = vector.load %arg8[%c0_27, %c0_28] : memref<1x32xf32, #tpu.memory_space<vmem>>, vector<1x32xf32>
    %52 = vector.broadcast %51 : vector<1x32xf32> to vector<8x32xf32>
    %53 = arith.addf %50, %52 : vector<8x32xf32>
    %54 = arith.mulf %53, %53 : vector<8x32xf32>
    %55 = arith.mulf %53, %54 : vector<8x32xf32>
    %cst_29 = arith.constant 4.471500e-02 : f32
    %56 = vector.broadcast %cst_29 : f32 to vector<8x32xf32>
    %57 = arith.mulf %56, %55 : vector<8x32xf32>
    %58 = arith.addf %53, %57 : vector<8x32xf32>
    %cst_30 = arith.constant 0.797884583 : f32
    %59 = vector.broadcast %cst_30 : f32 to vector<8x32xf32>
    %60 = arith.mulf %59, %58 : vector<8x32xf32>
    %61 = math.tanh %60 : vector<8x32xf32>
    %cst_31 = arith.constant 1.000000e+00 : f32
    %62 = vector.broadcast %cst_31 : f32 to vector<8x32xf32>
    %63 = arith.addf %62, %61 : vector<8x32xf32>
    %cst_32 = arith.constant 5.000000e-01 : f32
    %64 = vector.broadcast %cst_32 : f32 to vector<8x32xf32>
    %65 = arith.mulf %64, %63 : vector<8x32xf32>
    %66 = arith.mulf %53, %65 : vector<8x32xf32>
    %67 = arith.truncf %66 : vector<8x32xf32> to vector<8x32xbf16>
    %c0_33 = arith.constant 0 : index
    %c0_34 = arith.constant 0 : index
    %68 = vector.load %arg9[%c0_33, %c0_34] : memref<32x2xbf16, #tpu.memory_space<vmem>>, vector<32x2xbf16>
    %cst_35 = arith.constant dense<0.000000e+00> : vector<8x2xf32>
    %69 = tpu.matmul %67, %68, %cst_35 {dimension_numbers = #tpu.dot_dimension_numbers<[1], [0], [0], [1], [0, 0, 1, 1], [], []>} : vector<8x32xbf16>, vector<32x2xbf16>, vector<8x2xf32> -> vector<8x2xf32>
    %c0_36 = arith.constant 0 : index
    %c0_37 = arith.constant 0 : index
    %70 = vector.load %arg10[%c0_36, %c0_37] : memref<1x2xf32, #tpu.memory_space<vmem>>, vector<1x2xf32>
    %71 = vector.broadcast %70 : vector<1x2xf32> to vector<8x2xf32>
    %72 = arith.addf %69, %71 : vector<8x2xf32>
    %73 = arith.negf %72 : vector<8x2xf32>
    %74 = math.exp %73 : vector<8x2xf32>
    %cst_38 = arith.constant 1.000000e+00 : f32
    %75 = vector.broadcast %cst_38 : f32 to vector<8x2xf32>
    %76 = arith.addf %75, %74 : vector<8x2xf32>
    %77 = arith.divf %75, %76 : vector<8x2xf32>
    %c0_39 = arith.constant 0 : index
    %c0_40 = arith.constant 0 : index
    %c0_41 = arith.constant 0 : index
    %78 = vector.load %arg11[%c0_39, %c0_40, %c0_41] : memref<1x8x2xf32, #tpu.memory_space<vmem>>, vector<1x8x2xf32>
    %79 = vector.shape_cast %78 : vector<1x8x2xf32> to vector<8x2xf32>
    %80 = vector.shape_cast %77 : vector<8x2xf32> to vector<1x8x2xf32>
    tpu.vector_store %arg11[%c0_39, %c0_40, %c0_41], %80 {strides = array<i32>} : memref<1x8x2xf32, #tpu.memory_space<vmem>>, vector<1x8x2xf32>,
    return
  }
  func.func @transform_0(%arg0: i32, %arg1: i32) -> (i32, i32, i32) {
    %c0_i32 = arith.constant 0 : i32
    %c0_i32_0 = arith.constant 0 : i32
    %c0_i32_1 = arith.constant 0 : i32
    return %arg0, %c0_i32, %c0_i32_0 : i32, i32, i32
  }
  func.func @transform_1(%arg0: i32, %arg1: i32) -> (i32, i32) {
    %c0_i32 = arith.constant 0 : i32
    %c0_i32_0 = arith.constant 0 : i32
    %c0_i32_1 = arith.constant 0 : i32
    return %c0_i32, %c0_i32_0 : i32, i32
  }
  func.func @transform_2(%arg0: i32, %arg1: i32) -> (i32, i32) {
    %c0_i32 = arith.constant 0 : i32
    %c0_i32_0 = arith.constant 0 : i32
    %c0_i32_1 = arith.constant 0 : i32
    return %c0_i32, %c0_i32_0 : i32, i32
  }
  func.func @transform_3(%arg0: i32, %arg1: i32) -> (i32, i32) {
    %c0_i32 = arith.constant 0 : i32
    %c0_i32_0 = arith.constant 0 : i32
    %c0_i32_1 = arith.constant 0 : i32
    return %c0_i32, %c0_i32_0 : i32, i32
  }
  func.func @transform_4(%arg0: i32, %arg1: i32) -> (i32, i32) {
    %c0_i32 = arith.constant 0 : i32
    %c0_i32_0 = arith.constant 0 : i32
    %c0_i32_1 = arith.constant 0 : i32
    return %c0_i32, %c0_i32_0 : i32, i32
  }
  func.func @transform_5(%arg0: i32, %arg1: i32) -> (i32, i32) {
    %c0_i32 = arith.constant 0 : i32
    %c0_i32_0 = arith.constant 0 : i32
    %c0_i32_1 = arith.constant 0 : i32
    return %c0_i32, %c0_i32_0 : i32, i32
  }
  func.func @transform_6(%arg0: i32, %arg1: i32) -> (i32, i32) {
    %c0_i32 = arith.constant 0 : i32
    %c0_i32_0 = arith.constant 0 : i32
    %c0_i32_1 = arith.constant 0 : i32
    return %c0_i32, %c0_i32_0 : i32, i32
  }
  func.func @transform_7(%arg0: i32, %arg1: i32) -> (i32, i32) {
    %c0_i32 = arith.constant 0 : i32
    %c0_i32_0 = arith.constant 0 : i32
    %c0_i32_1 = arith.constant 0 : i32
    return %c0_i32, %c0_i32_0 : i32, i32
  }
  func.func @transform_8(%arg0: i32, %arg1: i32) -> (i32, i32) {
    %c0_i32 = arith.constant 0 : i32
    %c0_i32_0 = arith.constant 0 : i32
    %c0_i32_1 = arith.constant 0 : i32
    return %c0_i32, %c0_i32_0 : i32, i32
  }
  func.func @transform_9(%arg0: i32, %arg1: i32) -> (i32, i32, i32) {
    %c0_i32 = arith.constant 0 : i32
    %c0_i32_0 = arith.constant 0 : i32
    return %arg0, %arg1, %c0_i32 : i32, i32, i32
  }
}

</mosaic_0001>

<bundles_post_ra>
// kernel: trigger_recognizer.1
= control target key start
LH: loop header
LB: loop body
LE: loop exit
PB: predicated region body
PF: predicated region fallthrough
CT: control target
= control target key end

     0   :  { %s2016_s30 = smov 0   ;;  %s2018_s10 = smov 0   ;;  %s2240_s0 = inlined_call_operand.vmem [shape: f32[2,8,32], index: 0, kind: input, shape index: {}]   ;;  %s2241_s1 = inlined_call_operand.vmem [shape: bf16[32,96], index: 1, kind: input, shape index: {}]   ;;  %s2242_s2 = inlined_call_operand.vmem [shape: f32[1,96], index: 2, kind: input, shape index: {}]   ;;  %s2243_s3 = inlined_call_operand.vmem [shape: f32[1,32], index: 3, kind: input, shape index: {}]   ;;  %s2244_s4 = inlined_call_operand.vmem [shape: f32[1,32], index: 4, kind: input, shape index: {}]   ;;  %s2245_s5 = inlined_call_operand.vmem [shape: bf16[32,32], index: 5, kind: input, shape index: {}]   ;;  %s2246_s6 = inlined_call_operand.vmem [shape: f32[1,32], index: 6, kind: input, shape index: {}]   ;;  %s2247_s7 = inlined_call_operand.vmem [shape: bf16[32,2], index: 7, kind: input, shape index: {}]   ;;  %s2248_s8 = inlined_call_operand.vmem [shape: f32[1,2], index: 8, kind: input, shape index: {}]   ;;  %s2249_s9 = inlined_call_operand.vmem [shape: f32[2,8,2], index: 9, kind: output, shape index: {}]  }
   0x1   :  { %s2020_s11 = smov 0  }
   0x2 LB: > { %s31_s12 = sadd.s32 1, %s1948_s10  ;;  %p1731_p0 = scmp.ge.s32.totalorder %s1952_s11, 1  ;;  %s1952_s11 = sphi %s2020_s11, %s19_s11   ;;  %s1948_s10 = sphi %s2018_s10, %s2251_s10   ;;  %s1944_s30 = sphi %s2016_s30, %s2250_s30  }
   0x3   : > { %p33_p1 = scmp.ge.s32.totalorder %s31_s12, 2  ;;  %p300_p2 = scmp.lt.s32.totalorder %s1952_s11, 3 }
   0x5   : > { %s2253_s12 = smov (%p33_p1, %s31_s12), 0  ;;  %p301_p3 = pnand %p1731_p0, %p300_p2 }
   0x6   : > { %p337_p4 = scmp.lt.s32.totalorder (!%p301_p3), %s1944_s30, 1  ;;  %s1956_s23 = smov (!%p301_p3), 104  }
   0x7   : > { %304 = sbr.rel (%p301_p3) target bundleno = 1947 (0x79b), region = 56  ;;  %s1957_s24 = smov (!%p301_p3), 120  }
   0x8   : > { %s1958_s25 = smov (!%p301_p3), 96   ;;  %s1959_s26 = smov (!%p301_p3), 112  }
   0x9   : > { %s1962_s27 = smov (!%p301_p3), 64   ;;  %s1963_s28 = smov (!%p301_p3), 16  }
   0xa   : > { %s1964_s29 = smov (!%p301_p3), 8   ;;  %s1965_s13 = smov (!%p301_p3), 24  }
   0xc   : > { %v1900_v0 = vld [vmem:[%s2241_s1 + $0x8] sm:$0xff]   ;;  %v1954_v1 = vmov 0.0   ;;  %v1901_v2 = vld [vmem:[%s2241_s1] sm:$0xff]   ;;  %vm1955_vm0 = vmmov 0   ;;  %s2255_s30 = smov (!%p337_p4, %s1944_s30), 1  ;;  %vm378_vm1 = vcmask 261120   ;;  %v437_v13 = vlaneseq }
   0xd   : > { %1792 = vmatprep.subr.bf16.mxu0 %v1954_v1  ;;  %1800 = vmatprep.subr.bf16.mxu1 %v1954_v1  ;;  %s1732_s17 = sshll.u32 %s2255_s30, 3  ;;  %v1734_v5 = vld [vmem:[%s2242_s2] ss:$0 sm:$0xff]  ;;  %v1960_v11 = vmov 1983009808   ;;  %vm572_vm2 = vcmask 60416  }
   0xe   : > { %1793 = vmatpush3.bf16.msra.mxu0 %v1900_v0  ;;  %1796 = vmatprep.mubr.msk.bf16.mxu0 %vm1955_vm0, %v1954_v1  ;;  %s340_s20 = scalar_lea.vmem %s2240_s0, %s1732_s17  ;;  %v435_v12 = vunpack.c.l.s4 %v1960_v11  ;;  %v1961_v14 = vmov 1934713408   ;;  %v438_v17 = vshrl.u32 %v437_v13, 7  ;;  %vm898_vm3 = vcmask 64512   ;;  %s347_s16 = scalar_lea.vmem %s2249_s9, %s1732_s17 }
   0xf   : > { %1794 = vmatprep.subr.bf16.mxu0 %v1954_v1  ;;  %1802 = vmatprep.mubr.msk.bf16.mxu1 %vm1955_vm0, %v1954_v1  ;;  %v2056_v3 = vld [vmem:[%s340_s20] sm:$0xff]  ;;  %v467_v15 = vunpack.c.l.s4 %v1961_v14  ;;  %vm1130_vm4 = vcmask 1043456   ;;  %vm1469_vm5 = vcmask 130048   ;;  %vm1471_vm6 = vcmask 195584  }
  0x10   : > { %v354_v4 = vpack.c.bf16 %v2056_v3, %v2056_v3  ;;  %v436_v16 = vunpack.c.0.s8 %v435_v12  ;;  %vm1654_vm7 = vcmask 15360  }
  0x11   : > { %v468_v20 = vunpack.c.0.s8 %v467_v15 }
  0x12   : > { %1795 = vmatpush3.bf16.msra.mxu0 %v1901_v2  ;;  %v2066_v21 = vsub.s32 %v436_v16, %v438_v17 }
  0x13   : > { %1806 = vmatprep.subr.bf16.mxu0 %v1954_v1  ;;  %v2068_v27 = vsub.s32 %v468_v20, %v438_v17 }
  0x15   : > { %1797 = vmatmul.mubr.msk.bf16.vlgmr.msra.gmra.mxu0 %vm378_vm1, %v354_v4 }
  0x16   : > { %1808 = vmatprep.mubr.msk.bf16.mxu0 %vm1955_vm0, %v1954_v1 }
  0xd5   : > { %v416_v6 = vpop.f32.mrf.mxu0 }
  0xd6   : > { %v417_v7 = vadd.f32 %v1734_v5, %v416_v6 }
  0xd7   : > { %v1798_v8 = vpop.f32.mrf.mxu0 }
  0xd8   : > { %429 = vrot.lane.b32.xlu1 %v417_v7, %s1956_s23  ;;  %423 = vrot.lane.b32.xlu0 %v417_v7, %s1957_s24 }
  0xd9   : > { %v419_v9 = vpop.f32.mrf.mxu0 }
  0xdb   : > { %v1799_v10 = vpop.f32.mrf.mxu0 }
  0xdc   : > { %577 = vrot.lane.b32.xlu1 %v417_v7, %s1958_s25  ;;  %426 = vrot.lane.b32.xlu0 %v417_v7, %s1959_s26 }
 0x14a   : > { %v430_v18 = vpop.permute.xlu1 %429  ;;  %v424_v19 = vpop.permute.xlu0 %423 }
 0x14b   : > { %579 = vrot.lane.b32.xlu0 %v424_v19, %s1958_s25  ;;  %v448_v22 = vcombine.low %v424_v19, %v430_v18  ;;  %v449_v23 = vcombine.high %v424_v19, %v430_v18 }
 0x14d   : > { %v456_v28 = vrot.slane %v448_v22, %v2066_v21  ;;  %v463_v29 = vrot.slane %v449_v23, %v2066_v21 }
 0x14e   : > { %v427_v24 = vpop.permute.xlu0 %426  ;;  %v578_v0 = vpop.permute.xlu1 %577 }
 0x14f   : > { %v432_v25 = vcombine.low %v417_v7, %v427_v24  ;;  %v433_v26 = vcombine.high %v417_v7, %v427_v24  ;;  %583 = vrot.lane.b32.xlu0 %v430_v18, %s1958_s25  ;;  %581 = vrot.lane.b32.xlu1 %v427_v24, %s1958_s25 }
 0x151   : > { %v440_v30 = vrot.slane %v432_v25, %v2066_v21  ;;  %v447_v31 = vrot.slane %v433_v26, %v2066_v21 }
 0x153   : > { %v464_v32 = vcombine.low %v440_v30, %v456_v28  ;;  %v465_v33 = vcombine.high %v440_v30, %v456_v28  ;;  %v480_v34 = vcombine.low %v447_v31, %v463_v29  ;;  %v481_v35 = vcombine.high %v447_v31, %v463_v29  ;;  %735 = vrot.lane.b32.xlu0 %v424_v19, %s1962_s27 }
 0x154   : > { %733 = vrot.lane.b32.xlu1 %v417_v7, %s1962_s27 }
 0x155   : > { %v472_v36 = vrot.slane %v464_v32, %v2068_v27  ;;  %v479_v37 = vrot.slane %v465_v33, %v2068_v27  ;;  %v488_v38 = vrot.slane %v480_v34, %v2068_v27  ;;  %v495_v39 = vrot.slane %v481_v35, %v2068_v27 }
 0x157   : > { %v500_v40 = vcombine.low %v472_v36, %v479_v37  ;;  %v1738_v41 = vcombine.high %v472_v36, %v479_v37  ;;  %v516_v42 = vcombine.low %v488_v38, %v495_v39  ;;  %v1739_v43 = vcombine.high %v488_v38, %v495_v39  ;;  %739 = vrot.lane.b32.xlu0 %v430_v18, %s1962_s27 }
 0x158   : > { %737 = vrot.lane.b32.xlu1 %v427_v24, %s1962_s27 }
 0x159   : > { %v507_v44 = vrot.slane %v500_v40, %v2066_v21  ;;  %v515_v45 = vrot.slane %v1738_v41, %v2066_v21  ;;  %v523_v46 = vrot.slane %v516_v42, %v2066_v21  ;;  %v531_v47 = vrot.slane %v1739_v43, %v2066_v21 }
 0x15b   : > { %v532_v48 = vcombine.low %v507_v44, %v515_v45  ;;  %v533_v49 = vcombine.high %v507_v44, %v515_v45  ;;  %v548_v50 = vcombine.low %v523_v46, %v531_v47  ;;  %v549_v51 = vcombine.high %v523_v46, %v531_v47 }
 0x15d   : > { %v540_v52 = vrot.slane %v532_v48, %v2068_v27  ;;  %v547_v53 = vrot.slane %v533_v49, %v2068_v27  ;;  %v556_v54 = vrot.slane %v548_v50, %v2068_v27  ;;  %v563_v55 = vrot.slane %v549_v51, %v2068_v27 }
 0x15f   : > { %v564_v56 = vcombine.low %v540_v52, %v556_v54  ;;  %v565_v57 = vcombine.high %v540_v52, %v556_v54  ;;  %v566_v58 = vcombine.low %v547_v53, %v563_v55  ;;  %v567_v59 = vcombine.high %v547_v53, %v563_v55 }
 0x161   : > { %v568_v60 = vpack.c.bf16 %v564_v56, %v564_v56  ;;  %v569_v61 = vpack.c.bf16 %v565_v57, %v565_v57  ;;  %v570_v62 = vpack.c.bf16 %v566_v58, %v566_v58  ;;  %v571_v63 = vpack.c.bf16 %v567_v59, %v567_v59 }
 0x163   : > { %573 = vst.msk [vmem:[#allocation2] sm:$0xf] %vm572_vm2, %v568_v60  ;;  %574 = vst.msk [vmem:[#allocation2 + $0x4] sm:$0xf] %vm572_vm2, %v569_v61 }
 0x164   : > { %575 = vst.msk [vmem:[#allocation2 + $0x8] sm:$0xf] %vm572_vm2, %v570_v62  ;;  %576 = vst.msk [vmem:[#allocation2 + $0xc] sm:$0xf] %vm572_vm2, %v571_v63 }
 0x1bd   : > { %v580_v2 = vpop.permute.xlu0 %579 }
 0x1c1   : > { %v582_v4 = vpop.permute.xlu1 %581  ;;  %v584_v5 = vpop.permute.xlu0 %583 }
 0x1c2   : > { %v589_v6 = vcombine.low %v578_v0, %v582_v4  ;;  %v590_v7 = vcombine.high %v578_v0, %v582_v4  ;;  %v605_v8 = vcombine.low %v580_v2, %v584_v5  ;;  %v606_v9 = vcombine.high %v580_v2, %v584_v5 }
 0x1c4   : > { %v597_v10 = vrot.slane %v589_v6, %v2066_v21  ;;  %v604_v11 = vrot.slane %v590_v7, %v2066_v21  ;;  %v613_v12 = vrot.slane %v605_v8, %v2066_v21  ;;  %v620_v13 = vrot.slane %v606_v9, %v2066_v21 }
 0x1c5   : > { %v736_v14 = vpop.permute.xlu0 %735 }
 0x1c6   : > { %v621_v15 = vcombine.low %v597_v10, %v613_v12  ;;  %v622_v16 = vcombine.high %v597_v10, %v613_v12  ;;  %v637_v17 = vcombine.low %v604_v11, %v620_v13  ;;  %v638_v18 = vcombine.high %v604_v11, %v620_v13  ;;  %v734_v19 = vpop.permute.xlu1 %733 }
 0x1c8   : > { %v629_v20 = vrot.slane %v621_v15, %v2068_v27  ;;  %v636_v22 = vrot.slane %v622_v16, %v2068_v27  ;;  %v645_v23 = vrot.slane %v637_v17, %v2068_v27  ;;  %v652_v24 = vrot.slane %v638_v18, %v2068_v27 }
 0x1c9   : > { %v740_v25 = vpop.permute.xlu0 %739 }
 0x1ca   : > { %v657_v26 = vcombine.low %v629_v20, %v636_v22  ;;  %v1740_v28 = vcombine.high %v629_v20, %v636_v22  ;;  %v673_v29 = vcombine.low %v645_v23, %v652_v24  ;;  %v1741_v30 = vcombine.high %v645_v23, %v652_v24  ;;  %v738_v31 = vpop.permute.xlu1 %737 }
 0x1cb   : > { %v745_v32 = vcombine.low %v734_v19, %v738_v31  ;;  %v746_v33 = vcombine.high %v734_v19, %v738_v31  ;;  %v761_v34 = vcombine.low %v736_v14, %v740_v25  ;;  %v762_v35 = vcombine.high %v736_v14, %v740_v25 }
 0x1cc   : > { %v664_v36 = vrot.slane %v657_v26, %v2066_v21  ;;  %v672_v37 = vrot.slane %v1740_v28, %v2066_v21  ;;  %v680_v38 = vrot.slane %v673_v29, %v2066_v21  ;;  %v688_v39 = vrot.slane %v1741_v30, %v2066_v21 }
 0x1cd   : > { %v753_v40 = vrot.slane %v745_v32, %v2066_v21  ;;  %v760_v41 = vrot.slane %v746_v33, %v2066_v21  ;;  %v769_v42 = vrot.slane %v761_v34, %v2066_v21  ;;  %v776_v43 = vrot.slane %v762_v35, %v2066_v21 }
 0x1ce   : > { %v689_v44 = vcombine.low %v664_v36, %v672_v37  ;;  %v690_v45 = vcombine.high %v664_v36, %v672_v37  ;;  %v705_v46 = vcombine.low %v680_v38, %v688_v39  ;;  %v706_v47 = vcombine.high %v680_v38, %v688_v39  ;;  %v889_v38 = vld [vmem:[#allocation2] sm:$0xf]  ;;  %v890_v39 = vld [vmem:[#allocation2 + $0x4] sm:$0xf] }
 0x1cf   : > { %v777_v48 = vcombine.low %v753_v40, %v769_v42  ;;  %v778_v49 = vcombine.high %v753_v40, %v769_v42  ;;  %v793_v50 = vcombine.low %v760_v41, %v776_v43  ;;  %v794_v51 = vcombine.high %v760_v41, %v776_v43 }
 0x1d0   : > { %v697_v52 = vrot.slane %v689_v44, %v2068_v27  ;;  %v704_v53 = vrot.slane %v690_v45, %v2068_v27  ;;  %v713_v54 = vrot.slane %v705_v46, %v2068_v27  ;;  %v720_v55 = vrot.slane %v706_v47, %v2068_v27  ;;  %v891_v44 = vld [vmem:[#allocation2 + $0x8] sm:$0xf]  ;;  %v892_v45 = vld [vmem:[#allocation2 + $0xc] sm:$0xf] }
 0x1d1   : > { %v785_v56 = vrot.slane %v777_v48, %v2068_v27  ;;  %v792_v57 = vrot.slane %v778_v49, %v2068_v27  ;;  %v801_v58 = vrot.slane %v793_v50, %v2068_v27  ;;  %v808_v59 = vrot.slane %v794_v51, %v2068_v27 }
 0x1d2   : > { %v721_v60 = vcombine.low %v697_v52, %v713_v54  ;;  %v722_v61 = vcombine.high %v697_v52, %v713_v54  ;;  %v723_v62 = vcombine.low %v704_v53, %v720_v55  ;;  %v724_v63 = vcombine.high %v704_v53, %v720_v55 }
 0x1d3   : > { %v813_v0 = vcombine.low %v785_v56, %v792_v57  ;;  %v1742_v2 = vcombine.high %v785_v56, %v792_v57  ;;  %v829_v4 = vcombine.low %v801_v58, %v808_v59  ;;  %v1743_v5 = vcombine.high %v801_v58, %v808_v59 }
 0x1d4   : > { %v725_v6 = vpack.c.bf16 %v721_v60, %v721_v60  ;;  %v726_v7 = vpack.c.bf16 %v722_v61, %v722_v61  ;;  %v727_v8 = vpack.c.bf16 %v723_v62, %v723_v62  ;;  %v728_v9 = vpack.c.bf16 %v724_v63, %v724_v63 }
 0x1d5   : > { %v820_v10 = vrot.slane %v813_v0, %v2066_v21  ;;  %v828_v11 = vrot.slane %v1742_v2, %v2066_v21  ;;  %v836_v12 = vrot.slane %v829_v4, %v2066_v21  ;;  %v844_v13 = vrot.slane %v1743_v5, %v2066_v21 }
 0x1d6   : > { %729 = vst.msk [vmem:[#allocation3] sm:$0xf] %vm572_vm2, %v725_v6  ;;  %730 = vst.msk [vmem:[#allocation3 + $0x4] sm:$0xf] %vm572_vm2, %v726_v7 }
 0x1d7   : > { %731 = vst.msk [vmem:[#allocation3 + $0x8] sm:$0xf] %vm572_vm2, %v727_v8  ;;  %732 = vst.msk [vmem:[#allocation3 + $0xc] sm:$0xf] %vm572_vm2, %v728_v9  ;;  %v845_v14 = vcombine.low %v820_v10, %v828_v11  ;;  %v846_v15 = vcombine.high %v820_v10, %v828_v11  ;;  %v861_v16 = vcombine.low %v836_v12, %v844_v13 }
 0x1d8   : > { %v862_v17 = vcombine.high %v836_v12, %v844_v13 }
 0x1d9   : > { %v853_v18 = vrot.slane %v845_v14, %v2068_v27  ;;  %v860_v19 = vrot.slane %v846_v15, %v2068_v27  ;;  %v869_v20 = vrot.slane %v861_v16, %v2068_v27 }
 0x1da   : > { %v876_v22 = vrot.slane %v862_v17, %v2068_v27 }
 0x1db   : > { %v877_v23 = vcombine.low %v853_v18, %v869_v20  ;;  %v878_v24 = vcombine.high %v853_v18, %v869_v20 }
 0x1dc   : > { %v879_v25 = vcombine.low %v860_v19, %v876_v22  ;;  %v880_v26 = vcombine.high %v860_v19, %v876_v22 }
 0x1dd   : > { %v881_v28 = vpack.c.bf16 %v877_v23, %v877_v23  ;;  %v882_v29 = vpack.c.bf16 %v878_v24, %v878_v24  ;;  %v894_v32 = vld [vmem:[#allocation3] sm:$0xf]  ;;  %v895_v33 = vld [vmem:[#allocation3 + $0x4] sm:$0xf] }
 0x1de   : > { %v883_v30 = vpack.c.bf16 %v879_v25, %v879_v25  ;;  %v884_v31 = vpack.c.bf16 %v880_v26, %v880_v26  ;;  %v903_v34 = vsel %vm898_vm3, %v894_v32, 0  ;;  %v949_v35 = vsel %vm898_vm3, %v895_v33, 0  ;;  %v896_v36 = vld [vmem:[#allocation3 + $0x8] sm:$0xf]  ;;  %v897_v37 = vld [vmem:[#allocation3 + $0xc] sm:$0xf] }
 0x1df   : > { %885 = vst.msk [vmem:[#allocation4] sm:$0xf] %vm572_vm2, %v881_v28  ;;  %886 = vst.msk [vmem:[#allocation4 + $0x4] sm:$0xf] %vm572_vm2, %v882_v29  ;;  %1801 = vmatpush3.bf16.xpose.msra.mxu1 %v903_v34  ;;  %1807 = vmatpush3.bf16.xpose.msra.mxu0 %v949_v35  ;;  %v995_v40 = vsel %vm898_vm3, %v896_v36, 0  ;;  %v1041_v41 = vsel %vm898_vm3, %v897_v37, 0 }
 0x1e0   : > { %887 = vst.msk [vmem:[#allocation4 + $0x8] sm:$0xf] %vm572_vm2, %v883_v30  ;;  %888 = vst.msk [vmem:[#allocation4 + $0xc] sm:$0xf] %vm572_vm2, %v884_v31  ;;  %1812 = vmatprep.subr.bf16.mxu1 %v1954_v1  ;;  %1818 = vmatprep.subr.bf16.mxu0 %v1954_v1 }
 0x1e6   : > { %1803 = vmatmul.mubr.msk.bf16.vlgmr.msra.gmra.mxu1 %vm898_vm3, %v889_v38  ;;  %1809 = vmatmul.mubr.msk.bf16.vlgmr.msra.gmra.mxu0 %vm898_vm3, %v890_v39  ;;  %v1123_v42 = vld [vmem:[#allocation4] sm:$0xf]  ;;  %v1124_v43 = vld [vmem:[#allocation4 + $0x4] sm:$0xf] }
 0x1e7   : > { %1813 = vmatpush3.bf16.xpose.msra.mxu1 %v995_v40  ;;  %1819 = vmatpush3.bf16.xpose.msra.mxu0 %v1041_v41  ;;  %v1132_v46 = vsel %vm1130_vm4, %v1123_v42, 0  ;;  %v1178_v47 = vsel %vm1130_vm4, %v1124_v43, 0  ;;  %v1125_v19 = vld [vmem:[#allocation4 + $0x8] sm:$0xf]  ;;  %v1126_v24 = vld [vmem:[#allocation4 + $0xc] sm:$0xf] }
 0x1e8   : > { %1814 = vmatprep.mubr.msk.bf16.mxu1 %vm1955_vm0, %v1954_v1  ;;  %1820 = vmatprep.mubr.msk.bf16.mxu0 %vm1955_vm0, %v1954_v1  ;;  %v1224_v28 = vsel %vm1130_vm4, %v1125_v19, 0  ;;  %v1270_v29 = vsel %vm1130_vm4, %v1126_v24, 0 }
 0x1e9   : > { %1824 = vmatprep.subr.bf16.mxu1 %v1954_v1  ;;  %1830 = vmatprep.subr.bf16.mxu0 %v1954_v1 }
 0x1ee   : > { %1815 = vmatmul.mubr.msk.bf16.vlgmr.msra.gmra.mxu1 %vm898_vm3, %v891_v44  ;;  %1821 = vmatmul.mubr.msk.bf16.vlgmr.msra.gmra.mxu0 %vm898_vm3, %v892_v45 }
 0x1ef   : > { %1825 = vmatpush3.bf16.msra.mxu1 %v1132_v46  ;;  %1831 = vmatpush3.bf16.msra.mxu0 %v1178_v47 }
 0x1f0   : > { %1826 = vmatprep.mubr.msk.bf16.mxu1 %vm1955_vm0, %v1954_v1  ;;  %1832 = vmatprep.mubr.msk.bf16.mxu0 %vm1955_vm0, %v1954_v1 }
 0x1f1   : > { %1836 = vmatprep.subr.bf16.mxu1 %v1954_v1  ;;  %1842 = vmatprep.subr.bf16.mxu0 %v1954_v1 }
 0x2a6   : > { %v939_v48 = vpop.f32.mrf.mxu1  ;;  %v985_v49 = vpop.f32.mrf.mxu0 }
 0x2a7   : > { %v1083_v50 = vsel %vm898_vm3, %v939_v48, -inf  ;;  %v1086_v51 = vsel %vm898_vm3, %v985_v49, -inf }
 0x2a8   : > { %1084 = vmax.xlane.f32.xlu1 %v1083_v50  ;;  %v1804_v52 = vpop.f32.mrf.mxu1  ;;  %1087 = vmax.xlane.f32.xlu0 %v1086_v51  ;;  %v1810_v53 = vpop.f32.mrf.mxu0 }
 0x2aa   : > { %v942_v54 = vpop.f32.mrf.mxu1  ;;  %v988_v55 = vpop.f32.mrf.mxu0 }
 0x2ac   : > { %v1805_v56 = vpop.f32.mrf.mxu1  ;;  %v1811_v57 = vpop.f32.mrf.mxu0 }
 0x2ae   : > { %v1031_v58 = vpop.f32.mrf.mxu1  ;;  %v1077_v59 = vpop.f32.mrf.mxu0 }
 0x2af   : > { %v1089_v60 = vsel %vm898_vm3, %v1031_v58, -inf  ;;  %v1092_v61 = vsel %vm898_vm3, %v1077_v59, -inf }
 0x2b0   : > { %v1816_v62 = vpop.f32.mrf.mxu1  ;;  %1090 = vmax.xlane.f32.xlu0 %v1089_v60  ;;  %1093 = vmax.xlane.f32.xlu1 %v1092_v61  ;;  %v1822_v63 = vpop.f32.mrf.mxu0 }
 0x2b2   : > { %v1034_v0 = vpop.f32.mrf.mxu1  ;;  %v1080_v2 = vpop.f32.mrf.mxu0 }
 0x2b4   : > { %v1817_v4 = vpop.f32.mrf.mxu1  ;;  %v1823_v5 = vpop.f32.mrf.mxu0 }
 0x331   : > { %v1085_v6 = vpop.xlane.xlu1 %1084  ;;  %v1088_v7 = vpop.xlane.xlu0 %1087 }
 0x332   : > { %v1095_v8 = vsub.f32 %v939_v48, %v1085_v6  ;;  %v1096_v9 = vsub.f32 %v985_v49, %v1088_v7 }
 0x334   : > { %v1099_v10 = vmul.f32 1.442695, %v1095_v8  ;;  %v1101_v11 = vmul.f32 1.442695, %v1096_v9 }
 0x336   : > { %1906 = vpow2.f32 %v1099_v10 }
 0x337   : > { %1908 = vpow2.f32 %v1101_v11 }
 0x339   : > { %v1091_v12 = vpop.xlane.xlu0 %1090  ;;  %v1094_v13 = vpop.xlane.xlu1 %1093 }
 0x33a   : > { %v1097_v14 = vsub.f32 %v1031_v58, %v1091_v12  ;;  %v1098_v15 = vsub.f32 %v1077_v59, %v1094_v13 }
 0x33c   : > { %v1103_v16 = vmul.f32 1.442695, %v1097_v14  ;;  %v1105_v17 = vmul.f32 1.442695, %v1098_v15 }
 0x33e   : > { %1910 = vpow2.f32 %v1103_v16 }
 0x33f   : > { %1912 = vpow2.f32 %v1105_v17 }
 0x343   : > { %v1907_v18 = vpop.eup %1906 }
 0x344   : > { %v1909_v20 = vpop.eup %1908  ;;  %v1107_v22 = vsel %vm898_vm3, %v1907_v18, 0.0  ;;  %v1119_v23 = vpack.c.bf16 %v1907_v18, %v1907_v18 }
 0x345   : > { %1108 = vadd.xlane.f32.xlu0 %v1107_v22  ;;  %v1110_v25 = vsel %vm898_vm3, %v1909_v20, 0.0  ;;  %v1120_v26 = vpack.c.bf16 %v1909_v20, %v1909_v20 }
 0x346   : > { %1111 = vadd.xlane.f32.xlu1 %v1110_v25  ;;  %1827 = vmatmul.mubr.msk.bf16.vlgmr.msra.gmra.mxu1 %vm898_vm3, %v1119_v23 }
 0x347   : > { %1833 = vmatmul.mubr.msk.bf16.vlgmr.msra.gmra.mxu0 %vm898_vm3, %v1120_v26  ;;  %1837 = vmatpush3.bf16.msra.mxu1 %v1224_v28 }
 0x348   : > { %1843 = vmatpush3.bf16.msra.mxu0 %v1270_v29  ;;  %1838 = vmatprep.mubr.msk.bf16.mxu1 %vm1955_vm0, %v1954_v1 }
 0x349   : > { %1844 = vmatprep.mubr.msk.bf16.mxu0 %vm1955_vm0, %v1954_v1  ;;  %1848 = vmatprep.subr.bf16.mxu1 %v1954_v1 }
 0x34a   : > { %1856 = vmatprep.subr.bf16.mxu0 %v1954_v1 }
 0x34b   : > { %v1911_v30 = vpop.eup %1910 }
 0x34c   : > { %v1913_v31 = vpop.eup %1912  ;;  %v1113_v32 = vsel %vm898_vm3, %v1911_v30, 0.0  ;;  %v1121_v33 = vpack.c.bf16 %v1911_v30, %v1911_v30 }
 0x34d   : > { %1114 = vadd.xlane.f32.xlu0 %v1113_v32  ;;  %v1116_v34 = vsel %vm898_vm3, %v1913_v31, 0.0  ;;  %v1122_v35 = vpack.c.bf16 %v1913_v31, %v1913_v31 }
 0x34e   : > { %1117 = vadd.xlane.f32.xlu1 %v1116_v34  ;;  %1839 = vmatmul.mubr.msk.bf16.vlgmr.msra.gmra.mxu1 %vm898_vm3, %v1121_v33 }
 0x34f   : > { %1845 = vmatmul.mubr.msk.bf16.vlgmr.msra.gmra.mxu0 %vm898_vm3, %v1122_v35  ;;  %1852 = vmatprep.mubr.msk.bf16.mxu1 %vm1955_vm0, %v1954_v1 }
 0x350   : > { %1860 = vmatprep.mubr.msk.bf16.mxu0 %vm1955_vm0, %v1954_v1 }
 0x3ce   : > { %v1109_v36 = vpop.xlane.xlu0 %1108 }
 0x3cf   : > { %v1112_v37 = vpop.xlane.xlu1 %1111  ;;  %1914 = vrcp.f32 %v1109_v36 }
 0x3d0   : > { %1916 = vrcp.f32 %v1112_v37 }
 0x3d6   : > { %v1115_v38 = vpop.xlane.xlu0 %1114 }
 0x3d7   : > { %v1118_v39 = vpop.xlane.xlu1 %1117  ;;  %1918 = vrcp.f32 %v1115_v38 }
 0x3d8   : > { %1920 = vrcp.f32 %v1118_v39 }
 0x3dc   : > { %v1915_v46 = vpop.eup %1914 }
 0x3dd   : > { %v1917_v48 = vpop.eup %1916 }
 0x3e4   : > { %v1919_v50 = vpop.eup %1918 }
 0x3e5   : > { %v1921_v52 = vpop.eup %1920 }
 0x406   : > { %v1168_v40 = vpop.f32.mrf.mxu1 }
 0x407   : > { %v1214_v41 = vpop.f32.mrf.mxu0  ;;  %v1316_v53 = vmul.f32 %v1915_v46, %v1168_v40 }
 0x408   : > { %v1828_v42 = vpop.f32.mrf.mxu1  ;;  %v1317_v56 = vmul.f32 %v1917_v48, %v1214_v41 }
 0x409   : > { %v1834_v43 = vpop.f32.mrf.mxu0 }
 0x40a   : > { %v1171_v44 = vpop.f32.mrf.mxu1 }
 0x40b   : > { %v1217_v45 = vpop.f32.mrf.mxu0 }
 0x40c   : > { %v1829_v47 = vpop.f32.mrf.mxu1 }
 0x40d   : > { %v1835_v49 = vpop.f32.mrf.mxu0 }
 0x40e   : > { %v1260_v51 = vpop.f32.mrf.mxu1 }
 0x40f   : > { %v1318_v54 = vmul.f32 %v1919_v50, %v1260_v51  ;;  %v1306_v55 = vpop.f32.mrf.mxu0  ;;  %v1902_v51 = vld [vmem:[%s2245_s5 + $0x8] sm:$0xff]  }
 0x410   : > { %v1319_v57 = vmul.f32 %v1921_v52, %v1306_v55  ;;  %v1840_v58 = vpop.f32.mrf.mxu1  ;;  %1849 = vmatpush3.bf16.msra.mxu1 %v1902_v51  ;;  %v1903_v52 = vld [vmem:[%s2245_s5] sm:$0xff]  }
 0x411   : > { %v1320_v59 = vcombine.low %v1316_v53, %v1318_v54  ;;  %v1321_v60 = vcombine.high %v1316_v53, %v1318_v54  ;;  %v1846_v61 = vpop.f32.mrf.mxu0  ;;  %1850 = vmatprep.subr.bf16.mxu1 %v1954_v1  ;;  %v1755_v58 = vld [vmem:[%s2244_s4] ss:$0 sm:$0xff] }
 0x412   : > { %v1336_v62 = vcombine.low %v1317_v56, %v1319_v57  ;;  %v1337_v63 = vcombine.high %v1317_v56, %v1319_v57  ;;  %v1263_v0 = vpop.f32.mrf.mxu1  ;;  %v1754_v56 = vld [vmem:[%s2243_s3] ss:$0 sm:$0xff] }
 0x413   : > { %v1328_v2 = vrot.slane %v1320_v59, %v2066_v21  ;;  %v1335_v4 = vrot.slane %v1321_v60, %v2066_v21  ;;  %v1309_v5 = vpop.f32.mrf.mxu0  ;;  %v1756_v0 = vld [vmem:[%s2246_s6] ss:$0 sm:$0xff] }
 0x414   : > { %v1344_v6 = vrot.slane %v1336_v62, %v2066_v21  ;;  %v1351_v7 = vrot.slane %v1337_v63, %v2066_v21  ;;  %v1841_v8 = vpop.f32.mrf.mxu1  ;;  %1851 = vmatpush3.bf16.msra.mxu1 %v1903_v52  ;;  %v1904_v62 = vld [vmem:[%s2247_s7 + $0x8] sm:$0xff]   ;;  %v1905_v63 = vld [vmem:[%s2247_s7] sm:$0xff]  }
 0x415   : > { %v1847_v9 = vpop.f32.mrf.mxu0  ;;  %1857 = vmatpush3.bf16.msra.mxu0 %v1904_v62 }
 0x416   : > { %v1352_v10 = vcombine.low %v1328_v2, %v1344_v6  ;;  %v1353_v11 = vcombine.high %v1328_v2, %v1344_v6  ;;  %v1368_v12 = vcombine.low %v1335_v4, %v1351_v7  ;;  %v1369_v13 = vcombine.high %v1335_v4, %v1351_v7  ;;  %1858 = vmatprep.subr.bf16.mxu0 %v1954_v1 }
 0x418   : > { %v1360_v14 = vrot.slane %v1352_v10, %v2068_v27  ;;  %v1367_v15 = vrot.slane %v1353_v11, %v2068_v27  ;;  %v1376_v16 = vrot.slane %v1368_v12, %v2068_v27  ;;  %v1383_v17 = vrot.slane %v1369_v13, %v2068_v27 }
 0x419   : > { %1859 = vmatpush3.bf16.msra.mxu0 %v1905_v63 }
 0x41a   : > { %v1388_v18 = vcombine.low %v1360_v14, %v1367_v15  ;;  %v1752_v19 = vcombine.high %v1360_v14, %v1367_v15  ;;  %v1404_v20 = vcombine.low %v1376_v16, %v1383_v17  ;;  %v1753_v22 = vcombine.high %v1376_v16, %v1383_v17  ;;  %v1760_v17 = vld [vmem:[%s2248_s8] ss:$0 sm:$0xff] }
 0x41c   : > { %v1395_v23 = vrot.slane %v1388_v18, %v2066_v21  ;;  %v1403_v24 = vrot.slane %v1752_v19, %v2066_v21  ;;  %v1411_v25 = vrot.slane %v1404_v20, %v2066_v21  ;;  %v1419_v26 = vrot.slane %v1753_v22, %v2066_v21 }
 0x41e   : > { %v1421_v28 = vcombine.high %v1395_v23, %v1403_v24  ;;  %v1437_v29 = vcombine.high %v1411_v25, %v1419_v26  ;;  %v1420_v30 = vcombine.low %v1395_v23, %v1403_v24  ;;  %v1436_v31 = vcombine.low %v1411_v25, %v1419_v26 }
 0x420   : > { %v1435_v32 = vrot.slane %v1421_v28, %v2068_v27  ;;  %v1451_v33 = vrot.slane %v1437_v29, %v2068_v27  ;;  %v1428_v34 = vrot.slane %v1420_v30, %v2068_v27  ;;  %v1444_v35 = vrot.slane %v1436_v31, %v2068_v27 }
 0x422   : > { %v1454_v36 = vcombine.low %v1435_v32, %v1451_v33  ;;  %v1453_v37 = vcombine.high %v1428_v34, %v1444_v35  ;;  %v1452_v38 = vcombine.low %v1428_v34, %v1444_v35  ;;  %v1455_v21 = vcombine.high %v1435_v32, %v1451_v33 }
 0x424   : > { %1461 = vrot.lane.b32.xlu1 %v1454_v36, %s1963_s28  ;;  %1457 = vrot.lane.b32.xlu0 %v1453_v37, %s1964_s29 }
 0x428   : > { %1465 = vrot.lane.b32.xlu1 %v1455_v21, %s1965_s13 }
 0x496   : > { %v1462_v39 = vpop.permute.xlu1 %1461  ;;  %v1458_v40 = vpop.permute.xlu0 %1457 }
 0x497   : > { %v1468_v41 = vsel %vm898_vm3, %v1452_v38, %v1458_v40 }
 0x498   : > { %v1470_v43 = vsel %vm1469_vm5, %v1468_v41, %v1462_v39 }
 0x49a   : > { %v1466_v42 = vpop.permute.xlu1 %1465 }
 0x49b   : > { %v1472_v44 = vsel %vm1471_vm6, %v1470_v43, %v1466_v42 }
 0x49c   : > { %v1473_v27 = vadd.f32 %v1472_v44, %v2056_v3 }
 0x49e   : > { %v1475_v45 = vsel %vm378_vm1, %v1473_v27, 0.0 }
 0x49f   : > { %1476 = vadd.xlane.f32.xlu0 %v1475_v45 }
 0x528   : > { %v1477_v46 = vpop.xlane.xlu0 %1476 }
 0x529   : > { %v1479_v47 = vmul.f32 0.03125, %v1477_v46 }
 0x52b   : > { %v1480_v48 = vsub.f32 %v1473_v27, %v1479_v47 }
 0x52d   : > { %v1481_v49 = vmul.f32 %v1480_v48, %v1480_v48 }
 0x52f   : > { %v1482_v50 = vsel %vm378_vm1, %v1481_v49, 0.0 }
 0x530   : > { %1483 = vadd.xlane.f32.xlu1 %v1482_v50 }
 0x5b9   : > { %v1484_v3 = vpop.xlane.xlu1 %1483 }
 0x5ba   : > { %v1485_v53 = vmul.f32 0.03125, %v1484_v3 }
 0x5bc   : > { %v1486_v54 = vadd.f32 1e-05, %v1485_v53 }
 0x5be   : > { %1922 = vrsqrt.f32 %v1486_v54 }
 0x5cb   : > { %v1923_v55 = vpop.eup %1922 }
 0x5cc   : > { %v1488_v57 = vmul.f32 %v1923_v55, %v1480_v48 }
 0x5ce   : > { %v1496_v59 = vmul.f32 %v1754_v56, %v1488_v57 }
 0x5d0   : > { %v1504_v60 = vadd.f32 %v1755_v58, %v1496_v59 }
 0x5d2   : > { %v1505_v61 = vpack.c.bf16 %v1504_v60, %v1504_v60 }
 0x5d4   : > { %1853 = vmatmul.mubr.msk.bf16.vlgmr.msra.gmra.mxu1 %vm378_vm1, %v1505_v61 }
 0x694   : > { %v1566_v2 = vpop.f32.mrf.mxu1 }
 0x695   : > { %v1567_v4 = vadd.f32 %v1756_v0, %v1566_v2 }
 0x696   : > { %v1854_v5 = vpop.f32.mrf.mxu1 }
 0x697   : > { %v1572_v6 = vmul.f32 %v1567_v4, %v1567_v4 }
 0x698   : > { %v1569_v7 = vpop.f32.mrf.mxu1 }
 0x699   : > { %v1573_v8 = vmul.f32 %v1572_v6, %v1567_v4 }
 0x69a   : > { %v1855_v9 = vpop.f32.mrf.mxu1 }
 0x69b   : > { %v1574_v10 = vmul.f32 0.044715, %v1573_v8 }
 0x69d   : > { %v1575_v11 = vadd.f32 %v1574_v10, %v1567_v4 }
 0x69f   : > { %v1576_v12 = vmul.f32 0.7978846, %v1575_v11 }
 0x6a1   : > { %1924 = vtanh.f32 %v1576_v12 }
 0x6ae   : > { %v1925_v1 = vpop.eup %1924 }
 0x6af   : > { %v1578_v13 = vadd.f32 1.0, %v1925_v1 }
 0x6b1   : > { %v1579_v14 = vmul.f32 0.5, %v1578_v13 }
 0x6b3   : > { %v1580_v15 = vmul.f32 %v1579_v14, %v1567_v4 }
 0x6b5   : > { %v1581_v16 = vpack.c.bf16 %v1580_v15, %v1580_v15 }
 0x6b7   : > { %1861 = vmatmul.mubr.msk.bf16.vlgmr.msra.gmra.mxu0 %vm378_vm1, %v1581_v16 }
 0x777   : > { %v1642_v18 = vpop.f32.mrf.mxu0 }
 0x778   : > { %v1643_v19 = vadd.f32 %v1760_v17, %v1642_v18 }
 0x779   : > { %v1862_v20 = vpop.f32.mrf.mxu0 }
 0x77a   : > { %v1764_v22 = vmul.f32 -1.442695, %v1643_v19 }
 0x77b   : > { %v1645_v23 = vpop.f32.mrf.mxu0 }
 0x77c   : > { %1926 = vpow2.f32 %v1764_v22 }
 0x77d   : > { %v1863_v24 = vpop.f32.mrf.mxu0 }
 0x789   : > { %v1927_v25 = vpop.eup %1926 }
 0x78a   : > { %v1651_v26 = vadd.f32 1.0, %v1927_v25 }
 0x78c   : > { %1928 = vrcp.f32 %v1651_v26 }
 0x799   : > { %v1929_v28 = vpop.eup %1928 }
 0x79a   : > { %1655 = vst.msk [vmem:[%s347_s16] sm:$0xff] %vm1654_vm7, %v1929_v28 }
 0x79b PF: > { %s19_s11 = sadd.s32 1, %s1952_s11   ;;  %s2250_s30 = smov %s1948_s10 }
 0x79c   : > { %p16_p5 = scmp.ge.s32.totalorder %s19_s11, 4   ;;  %s2251_s10 = smov %s2253_s12 }
 0x79e   :  { %18 = sbr.rel (!%p16_p5) target bundleno = 2 (0x2), region = 90 }

</bundles_post_ra>
